<compile_context>
chip_gen: v6e
topology: v6e:2x2x1
jax: 0.10.0
libtpu: 0.0.40
codegen_flags: <defaults>
</compile_context>

<pallas_src>
import jax
import jax.numpy as jnp
from jax.experimental import pallas as pl
from jax.experimental.pallas import tpu as pltpu


def _round_up(n: int, m: int) -> int:
    return ((n + m - 1) // m) * m


def _pad2d(a, rows, cols):
    r, c = a.shape
    if r == rows and c == cols:
        return a
    return jnp.pad(a, ((0, rows - r), (0, cols - c)))


# --------------------------------------------------------------------------
# Kernels
# --------------------------------------------------------------------------

def _ffn_resident_kernel(x_ref, w1_ref, w2_ref, b_ref, o_ref):
    """Weights fully VMEM-resident; one row tile per grid step."""
    h = jnp.dot(x_ref[...], w1_ref[...], preferred_element_type=jnp.float32)
    acc = jnp.dot(h.astype(w2_ref.dtype), w2_ref[...],
                  preferred_element_type=jnp.float32)
    o_ref[...] = (acc + b_ref[...]).astype(o_ref.dtype)


def _ffn_stream_kernel(x_ref, w1_ref, w2_ref, b_ref, o_ref, acc_ref):
    """dim_inner tiled on grid axis 1; output-stationary f32 accumulator."""
    k = pl.program_id(1)

    @pl.when(k == 0)
    def _init():
        acc_ref[...] = jnp.zeros_like(acc_ref)

    h = jnp.dot(x_ref[...], w1_ref[...], preferred_element_type=jnp.float32)
    acc_ref[...] += jnp.dot(h.astype(w2_ref.dtype), w2_ref[...],
                            preferred_element_type=jnp.float32)

    @pl.when(k == pl.num_programs(1) - 1)
    def _finalize():
        o_ref[...] = (acc_ref[...] + b_ref[...]).astype(o_ref.dtype)


# --------------------------------------------------------------------------
# Wrapper
# --------------------------------------------------------------------------

def _default_vmem_limit() -> int:
    """Generation-aware scoped-VMEM limit (bytes)."""
    phys = 128 * 1024 * 1024
    try:
        info = pltpu.get_tpu_info()
        phys = int(getattr(info, "vmem_capacity_bytes", phys))
    except Exception:
        pass
    if phys <= 64 * 1024 * 1024:          # v7x-class TC: 64 MiB physical
        return 56 * 1024 * 1024
    return 100 * 1024 * 1024              # v5e / v6e: 128 MiB physical


def feed_forward_channel(x, w1, b1, w2, b2, *, compute_dtype=None,
                         tm_max=512, vmem_limit_bytes=None):
    """y = (x @ w1 + b1) @ w2 + b2 for x of shape (..., dim_model).

    Weights are stored transposed vs PyTorch: w1 (dim_model, dim_inner),
    w2 (dim_inner, dim_model).  Returns an array shaped like x.
    """
    orig_shape = x.shape
    out_dtype = x.dtype
    dim_model = orig_shape[-1]
    dim_inner = w1.shape[1]

    cdtype = jnp.dtype(compute_dtype) if compute_dtype is not None else jnp.dtype(x.dtype)

    x2d = x.reshape(-1, dim_model)
    M = x2d.shape[0]

    vmem_limit = int(vmem_limit_bytes) if vmem_limit_bytes is not None else _default_vmem_limit()
    budget = int(vmem_limit * 0.85)       # headroom for sems / internal scratch

    xw_bytes = cdtype.itemsize
    out_bytes = jnp.dtype(out_dtype).itemsize
    sublane = {4: 8, 2: 16, 1: 32}.get(xw_bytes, 8)

    D_pad = _round_up(dim_model, 128)
    K_pad = _round_up(dim_inner, 128)

    # ---- row-tile candidates (largest first, multiples of the sublane) ----
    M_al = _round_up(M, sublane)
    tm_cands = sorted({min(max(t, sublane), M_al)
                       for t in (tm_max, 512, 384, 256, 128, 64, 32, 16, 8)},
                      reverse=True)
    tm_cands = [t for t in tm_cands if t % sublane == 0]

    def resident_bytes(tm):
        return (2 * 2 * D_pad * K_pad * xw_bytes      # W1 + W2 (2x buffers)
                + 2 * tm * D_pad * xw_bytes           # x row tile
                + 2 * tm * D_pad * out_bytes          # out tile
                + tm * K_pad * 4                      # materialized hidden (f32)
                + 2 * D_pad * 4)                      # fused bias

    def stream_bytes(tm, tk):
        return (2 * D_pad * tk * xw_bytes             # W1 chunk
                + 2 * tk * D_pad * xw_bytes           # W2 chunk
                + 2 * tm * D_pad * xw_bytes           # x row tile
                + 2 * tm * D_pad * out_bytes          # out tile
                + tm * D_pad * 4                      # f32 accumulator
                + tm * tk * 4                         # hidden chunk (f32)
                + 2 * D_pad * 4)                      # fused bias

    # Fold b1 into a single output-side bias (mathematically identical).
    b_eff = (b1.astype(jnp.float32) @ w2.astype(jnp.float32)
             + b2.astype(jnp.float32)).reshape(1, dim_model)

    flops = 4 * M * dim_model * dim_inner

    resident_tm = next((t for t in tm_cands if resident_bytes(t) <= budget), None)

    # ---------------------------------------------------------------------
    # Fast path: weights fully VMEM-resident, single-pass per row tile.
    # ---------------------------------------------------------------------
    if resident_tm is not None:
        tm = resident_tm
        # Ensure >= 2 row tiles so the "parallel" axis can be split across the
        # two TensorCores of a v7x chip (no cost elsewhere: weights load once).
        if _round_up(M, tm) // tm < 2:
            tm_half = _round_up(max(-(-M // 2), sublane), sublane)
            if tm_half < tm:
                tm = tm_half
        M_pad = _round_up(M, tm)

        x_p = _pad2d(x2d, M_pad, D_pad).astype(cdtype)
        w1_p = _pad2d(w1, D_pad, K_pad).astype(cdtype)
        w2_p = _pad2d(w2, K_pad, D_pad).astype(cdtype)
        b_p = _pad2d(b_eff, 1, D_pad)

        cost = pl.CostEstimate(
            flops=flops, transcendentals=0,
            bytes_accessed=int(x_p.size * xw_bytes
                               + (w1_p.size + w2_p.size) * xw_bytes
                               + b_p.size * 4
                               + M_pad * D_pad * out_bytes))

        out = pl.pallas_call(
            _ffn_resident_kernel,
            out_shape=jax.ShapeDtypeStruct((M_pad, D_pad), out_dtype),
            grid_spec=pltpu.PrefetchScalarGridSpec(
                num_scalar_prefetch=0,
                grid=(M_pad // tm,),
                in_specs=[
                    pl.BlockSpec((tm, D_pad), lambda i: (i, 0)),      # x tile
                    pl.BlockSpec((D_pad, K_pad), lambda i: (0, 0)),   # W1 (resident)
                    pl.BlockSpec((K_pad, D_pad), lambda i: (0, 0)),   # W2 (resident)
                    pl.BlockSpec((1, D_pad), lambda i: (0, 0)),       # fused bias
                ],
                out_specs=pl.BlockSpec((tm, D_pad), lambda i: (i, 0)),
            ),
            compiler_params=pltpu.CompilerParams(
                dimension_semantics=("parallel",),
                vmem_limit_bytes=vmem_limit,
            ),
            cost_estimate=cost,
        )(x_p, w1_p, w2_p, b_p)

        return out[:M, :dim_model].reshape(orig_shape)

    # ---------------------------------------------------------------------
    # Streaming path: tile dim_inner; weight chunks streamed per row tile.
    # ---------------------------------------------------------------------
    tk_cands = [t for t in (1024, 512, 384, 256, 128) if K_pad % t == 0]
    tm, tk = tm_cands[-1], 128
    found = False
    for t_m in tm_cands:                  # prefer large tm (arith intensity)
        for t_k in tk_cands:              # then the largest fitting k chunk
            if stream_bytes(t_m, t_k) <= budget:
                tm, tk = t_m, t_k
                found = True
                break
        if found:
            break
    M_pad = _round_up(M, tm)

    x_p = _pad2d(x2d, M_pad, D_pad).astype(cdtype)
    w1_p = _pad2d(w1, D_pad, K_pad).astype(cdtype)
    w2_p = _pad2d(w2, K_pad, D_pad).astype(cdtype)
    b_p = _pad2d(b_eff, 1, D_pad)

    n_row_tiles = M_pad // tm             # weights re-streamed once per row tile
    cost = pl.CostEstimate(
        flops=flops, transcendentals=0,
        bytes_accessed=int(x_p.size * xw_bytes
                           + n_row_tiles * (w1_p.size + w2_p.size) * xw_bytes
                           + b_p.size * 4
                           + M_pad * D_pad * out_bytes))

    out = pl.pallas_call(
        _ffn_stream_kernel,
        out_shape=jax.ShapeDtypeStruct((M_pad, D_pad), out_dtype),
        grid_spec=pltpu.PrefetchScalarGridSpec(
            num_scalar_prefetch=0,
            grid=(M_pad // tm, K_pad // tk),
            in_specs=[
                pl.BlockSpec((tm, D_pad), lambda i, k: (i, 0)),   # x row tile
                pl.BlockSpec((D_pad, tk), lambda i, k: (0, k)),   # W1 chunk
                pl.BlockSpec((tk, D_pad), lambda i, k: (k, 0)),   # W2 chunk
                pl.BlockSpec((1, D_pad),  lambda i, k: (0, 0)),   # fused bias
            ],
            out_specs=pl.BlockSpec((tm, D_pad), lambda i, k: (i, 0)),
            scratch_shapes=[pltpu.VMEM((tm, D_pad), jnp.float32)],
        ),
        compiler_params=pltpu.CompilerParams(
            dimension_semantics=("parallel", "arbitrary"),
            vmem_limit_bytes=vmem_limit,
        ),
        cost_estimate=cost,
    )(x_p, w1_p, w2_p, b_p)

    return out[:M, :dim_model].reshape(orig_shape)


def init_params(key, dim_model, dim_inner, dtype=jnp.float32):
    """Deterministic init matching PyTorch Linear shapes (stored transposed)."""
    k1, k2, k3, k4 = jax.random.split(key, 4)
    lim1 = 1.0 / (dim_model ** 0.5)
    lim2 = 1.0 / (dim_inner ** 0.5)
    # PyTorch stores weight as (out, in); we keep (in, out) for row-major matmul.
    w1 = jax.random.uniform(k1, (dim_model, dim_inner), dtype, -lim1, lim1)
    b1 = jax.random.uniform(k2, (dim_inner,), dtype, -lim1, lim1)
    w2 = jax.random.uniform(k3, (dim_inner, dim_model), dtype, -lim2, lim2)
    b2 = jax.random.uniform(k4, (dim_model,), dtype, -lim2, lim2)
    return w1, b1, w2, b2


if __name__ == "__main__":
    key = jax.random.PRNGKey(0)
    kx, kp = jax.random.split(key)

    # Small shapes; deliberately NOT multiples of 128 to exercise padding.
    batch, seq = 2, 8
    dim_model, dim_inner = 32, 64

    x = jax.random.normal(kx, (batch, seq, dim_model), dtype=jnp.float32)
    w1, b1, w2, b2 = init_params(kp, dim_model, dim_inner)

    y = feed_forward_channel(x, w1, b1, w2, b2)
    y = jax.block_until_ready(y)

    # Pure-JAX reference check.
    ref = ((x.reshape(-1, dim_model) @ w1 + b1) @ w2 + b2).reshape(x.shape)
    assert y.shape == x.shape
    assert jnp.allclose(y, ref, atol=1e-4, rtol=1e-4), "mismatch vs reference"

    print("KERNEL_OK")
</pallas_src>

<mosaic_0001>
module attributes {stable_mosaic.version = 11 : i64} {
  func.func @_ffn_resident_kernel(%arg0: i32, %arg1: memref<8x128xf32, #tpu.memory_space<vmem>>, %arg2: memref<128x128xf32, #tpu.memory_space<vmem>>, %arg3: memref<128x128xf32, #tpu.memory_space<vmem>>, %arg4: memref<1x128xf32, #tpu.memory_space<vmem>>, %arg5: memref<8x128xf32, #tpu.memory_space<vmem>>) attributes {dimension_semantics = [#tpu.dimension_semantics<parallel>], iteration_bounds = array<i64: 2>, scalar_prefetch = 0 : i64, scratch_operands = 0 : i64, tpu.core_type = #tpu.core_type<tc>, window_params = [{transform_indices = @transform_0, window_bounds = array<i64: 8, 128>}, {pipeline_mode = #tpu.pipeline_mode<synchronous>, transform_indices = @transform_1, window_bounds = array<i64: 128, 128>}, {pipeline_mode = #tpu.pipeline_mode<synchronous>, transform_indices = @transform_2, window_bounds = array<i64: 128, 128>}, {pipeline_mode = #tpu.pipeline_mode<synchronous>, transform_indices = @transform_3, window_bounds = array<i64: 1, 128>}, {transform_indices = @transform_4, window_bounds = array<i64: 8, 128>}]} {
    %c0 = arith.constant 0 : index
    %c0_0 = arith.constant 0 : index
    %0 = vector.load %arg1[%c0, %c0_0] : memref<8x128xf32, #tpu.memory_space<vmem>>, vector<8x128xf32>
    %c0_1 = arith.constant 0 : index
    %c0_2 = arith.constant 0 : index
    %1 = vector.load %arg2[%c0_1, %c0_2] : memref<128x128xf32, #tpu.memory_space<vmem>>, vector<128x128xf32>
    %cst = arith.constant dense<0.000000e+00> : vector<8x128xf32>
    %2 = tpu.matmul %0, %1, %cst {dimension_numbers = #tpu.dot_dimension_numbers<[1], [0], [0], [1], [0, 0, 1, 1], [], []>} : vector<8x128xf32>, vector<128x128xf32>, vector<8x128xf32> -> vector<8x128xf32>
    %c0_3 = arith.constant 0 : index
    %c0_4 = arith.constant 0 : index
    %3 = vector.load %arg3[%c0_3, %c0_4] : memref<128x128xf32, #tpu.memory_space<vmem>>, vector<128x128xf32>
    %cst_5 = arith.constant dense<0.000000e+00> : vector<8x128xf32>
    %4 = tpu.matmul %2, %3, %cst_5 {dimension_numbers = #tpu.dot_dimension_numbers<[1], [0], [0], [1], [0, 0, 1, 1], [], []>} : vector<8x128xf32>, vector<128x128xf32>, vector<8x128xf32> -> vector<8x128xf32>
    %c0_6 = arith.constant 0 : index
    %c0_7 = arith.constant 0 : index
    %5 = vector.load %arg4[%c0_6, %c0_7] : memref<1x128xf32, #tpu.memory_space<vmem>>, vector<1x128xf32>
    %6 = vector.broadcast %5 : vector<1x128xf32> to vector<8x128xf32>
    %7 = arith.addf %4, %6 : vector<8x128xf32>
    %c0_8 = arith.constant 0 : index
    %c0_9 = arith.constant 0 : index
    %8 = vector.load %arg5[%c0_8, %c0_9] : memref<8x128xf32, #tpu.memory_space<vmem>>, vector<8x128xf32>
    tpu.vector_store %arg5[%c0_8, %c0_9], %7 {strides = array<i32>} : memref<8x128xf32, #tpu.memory_space<vmem>>, vector<8x128xf32>,
    return
  }
  func.func @transform_0(%arg0: i32) -> (i32, i32) {
    %c0_i32 = arith.constant 0 : i32
    %c0_i32_0 = arith.constant 0 : i32
    return %arg0, %c0_i32 : i32, i32
  }
  func.func @transform_1(%arg0: i32) -> (i32, i32) {
    %c0_i32 = arith.constant 0 : i32
    %c0_i32_0 = arith.constant 0 : i32
    %c0_i32_1 = arith.constant 0 : i32
    return %c0_i32, %c0_i32_0 : i32, i32
  }
  func.func @transform_2(%arg0: i32) -> (i32, i32) {
    %c0_i32 = arith.constant 0 : i32
    %c0_i32_0 = arith.constant 0 : i32
    %c0_i32_1 = arith.constant 0 : i32
    return %c0_i32, %c0_i32_0 : i32, i32
  }
  func.func @transform_3(%arg0: i32) -> (i32, i32) {
    %c0_i32 = arith.constant 0 : i32
    %c0_i32_0 = arith.constant 0 : i32
    %c0_i32_1 = arith.constant 0 : i32
    return %c0_i32, %c0_i32_0 : i32, i32
  }
  func.func @transform_4(%arg0: i32) -> (i32, i32) {
    %c0_i32 = arith.constant 0 : i32
    %c0_i32_0 = arith.constant 0 : i32
    return %arg0, %c0_i32 : i32, i32
  }
}

</mosaic_0001>

<bundles_post_ra>
// kernel: tpu_custom_call.1
= control target key start
LH: loop header
LB: loop body
LE: loop exit
PB: predicated region body
PF: predicated region fallthrough
CT: control target
= control target key end

     0   :  { %9 = vsyncpa [#allocation3], 0  ;;  %s1116_s0 = inlined_call_operand.hbm [shape: f32[16,128], index: 0, kind: input, shape index: {}]   ;;  %s1117_s1 = inlined_call_operand.hbm [shape: f32[128,128], index: 1, kind: input, shape index: {}]   ;;  %s1118_s2 = inlined_call_operand.hbm [shape: f32[128,128], index: 2, kind: input, shape index: {}]   ;;  %s1119_s3 = inlined_call_operand.vmem [shape: f32[1,128], index: 3, kind: input, shape index: {}]   ;;  %s1120_s4 = inlined_call_operand.hbm [shape: f32[16,128], index: 4, kind: output, shape index: {}]  }
   0x1   :  { %11 = vsyncpa [#allocation3 + $0x1], 0 }
   0x2   :  { %12 = vsyncpa [#allocation6], 0 }
   0x3   :  { %13 = vsyncpa [#allocation4], 0 }
   0x4   :  { %15 = vsyncpa [#allocation4 + $0x1], 0  ;;  %s901_s15 = smov 0   ;;  %s903_s16 = smov 0  }
   0x5   :  { %s905_s17 = smov 0   ;;  %s907_s18 = smov 0  }
   0x6 LB: > { %s922_s19 = sadd.s32 4294967295, %s866_s18   ;;  %s526_s20 = sadd.s32 4294967294, %s866_s18   ;;  %s866_s18 = sphi %s907_s18, %s1142_s18   ;;  %s862_s17 = sphi %s905_s17, %s1141_s17   ;;  %s858_s16 = sphi %s903_s16, %s1140_s16   ;;  %s854_s15 = sphi %s901_s15, %s1139_s15  }
   0x7   : > { %p41_p0 = scmp.ne.s32.totalorder %s858_s16, %s854_s15  ;;  %p1121_p1 = scmp.eq.s32.totalorder %s922_s19, 0 }
   0x8   : > { %p134_p3 = scmp.eq.s32.totalorder %s526_s20, 1  ;;  %p527_p5 = scmp.ge.s32.totalorder %s866_s18, 1 }
   0x9   : > { %p931_p4 = por %p1121_p1, %p41_p0  ;;  %p141_p7 = scmp.lt.s32.totalorder %s866_s18, 3 }
   0xa   : > { %p936_p6 = por %p134_p3, %p41_p0  ;;  %s868_s24 = smov [#allocation5]  }
   0xb   : > { %s1125_s21 = scalar_select %p931_p4, 1, 0 }
   0xc   : > { %s1126_s22 = scalar_select %p936_p6, 1, 0 }
   0xd   : > { %p941_p8 = pnand %p527_p5, %p141_p7  ;;  %s153_s25 = sshll.u32 %s868_s24, 4  ;;  %s154_s25 = int_to_ptr.vmem [resolvable:$true] %s153_s25 }
   0xe   : > { %s869_s27 = smov [#allocation7]   ;;  %s729_s29 = scalar_lea.vmem %s154_s25, 2048 }
   0xf   : > { %s1127_s23 = scalar_select %p941_p8, 1, 0 }
  0x10   : > { %p659_p9 = pneg %p941_p8  ;;  %s166_s28 = sshll.u32 %s869_s27, 4  ;;  %s167_s28 = int_to_ptr.vmem [resolvable:$true] %s166_s28 }
  0x11   : > { %p730_p13 = scmp.ne.s32.totalorder %s154_s25, %s729_s29  ;;  %p737_p5 = scmp.lt.s32.totalorder %s154_s25, %s154_s25 }
  0x12   : > { %p950_p11 = pnand %p659_p9, %p1121_p1  ;;  %p738_p7 = scmp.lt.s32.totalorder %s729_s29, %s729_s29 }
  0x14   : > { %p720_p12 = pneg %p950_p11  ;;  %p739_p10 = por %p738_p7, %p737_p5 }
  0x16   : > { %p732_p0 = pnand %p730_p13, %p720_p12 }
  0x18   : > { %p733_p3 = pneg %p732_p0 }
  0x1a   : > { %p740_p9 = pnand %p739_p10, %p733_p3 }
  0x1c   : > { %743 = shalt.err (!%p740_p9)
}
  0x1d   : > { %s870_s30 = smov 128   ;;  %s871_s5 = smov 8  }
  0x1e   : > { %662 = dma.hbm_to_vmem [thread:$0]  (!%p950_p11), %s1117_s1, 2048, %s154_s25, [#allocation6], %s870_s30, %s870_s30, %s871_s5  }
  0x1f   : > { %s755_s8 = scalar_lea.vmem %s167_s28, 2048  ;;  %p763_p2 = scmp.lt.s32.totalorder %s167_s28, %s167_s28 }
  0x20   : > { %p756_p1 = scmp.ne.s32.totalorder %s167_s28, %s755_s8  ;;  %p764_p6 = scmp.lt.s32.totalorder %s755_s8, %s755_s8 }
  0x22   : > { %p758_p13 = pnand %p756_p1, %p720_p12  ;;  %p765_p5 = por %p764_p6, %p763_p2 }
  0x24   : > { %p759_p0 = pneg %p758_p13 }
  0x26   : > { %p766_p10 = pnand %p765_p5, %p759_p0 }
  0x28   : > { %769 = shalt.err (!%p766_p10)
}
  0x29   : > { %665 = dma.hbm_to_vmem [thread:$0]  (!%p950_p11), %s1118_s2, 2048, %s167_s28, [#allocation6], %s870_s30, %s870_s30, %s871_s5  }
  0x2a   : > { %s973_s11 = sadd.s32 1, %s866_s18   ;;  %s28_s12 = sadd.s32 1, %s862_s17 }
  0x2b   : > { %s25_s13 = ssub.s32 %s866_s18, %s973_s11  ;;  %p35_p1 = scmp.ne.s32.totalorder %s862_s17, %s858_s16 }
  0x2c   : > { %p26_p2 = scmp.eq.s32.totalorder %s25_s13, 0  ;;  %p36_p6 = scmp.eq.s32.totalorder %s866_s18, 0 }
  0x2d   : > { %p1129_p12 = scmp.eq.s32.totalorder %s922_s19, 1  ;;  %p676_p7 = scmp.lt.s32.totalorder %s866_s18, 2 }
  0x2e   : > { %s989_s20 = scalar_select %p26_p2, %s862_s17, %s28_s12  }
  0x2f   : > { %p983_p3 = por %p1129_p12, %p35_p1  ;;  %p37_p9 = por %p36_p6, %p35_p1 }
  0x30   : > { %s183_s24 = sand.u32 1, %s862_s17   ;;  %s532_s26 = sshll.u32 %s866_s18, 7 }
  0x31   : > { %s1130_s14 = scalar_select %p983_p3, 1, 0 }
  0x32   : > { %s531_s25 = sshll.u32 %s183_s24, 3  ;;  %s996_s29 = scalar_lea.hbm %s1116_s0, %s532_s26 }
  0x33   : > { %s187_s30 = scalar_lea.vmem [#allocation2], %s531_s25  ;;  %p998_p11 = pnand %p676_p7, %p37_p9 }
  0x34   : > { %s194_s5 = sshll.u32 %s187_s30, 4  ;;  %s184_s7 = scalar_lea.sflag [#allocation3], %s183_s24  ;;  %s195_s5 = int_to_ptr.vmem [resolvable:$true] %s194_s5 }
  0x35   : > { %s770_s8 = scalar_lea.hbm %s996_s29, 128  ;;  %p772_p0 = pneg %p998_p11 }
  0x36   : > { %p771_p13 = scmp.ne.s32.totalorder %s996_s29, %s770_s8  ;;  %s775_s12 = scalar_lea.hbm %s1116_s0, 256 }
  0x37   : > { %p776_p1 = scmp.lt.s32.totalorder %s996_s29, %s1116_s0  ;;  %p777_p2 = scmp.lt.s32.totalorder %s775_s12, %s770_s8 }
  0x38   : > { %p773_p5 = pnand %p772_p0, %p771_p13 }
  0x39   : > { %p778_p6 = por %p777_p2, %p776_p1 }
  0x3a   : > { %p774_p10 = pneg %p773_p5 }
  0x3c   : > { %p779_p12 = pnand %p778_p6, %p774_p10 }
  0x3e   : > { %782 = shalt.err (!%p779_p12)
}
  0x3f   : > { %s783_s26 = scalar_lea.vmem %s195_s5, 128  ;;  %s872_s24 = smov [#allocation2]  }
  0x40   : > { %p784_p7 = scmp.ne.s32.totalorder %s195_s5, %s783_s26  ;;  %s788_s27 = sshll.u32 %s872_s24, 4  ;;  %s789_s27 = int_to_ptr.vmem [resolvable:$false] %s788_s27 }
  0x41   : > { %s790_s28 = scalar_lea.vmem %s789_s27, 256  ;;  %p791_p13 = scmp.lt.s32.totalorder %s195_s5, %s789_s27 }
  0x42   : > { %p786_p9 = pnand %p784_p7, %p772_p0  ;;  %p792_p5 = scmp.lt.s32.totalorder %s790_s28, %s783_s26 }
  0x44   : > { %p787_p3 = pneg %p786_p9  ;;  %p793_p4 = por %p792_p5, %p791_p13 }
  0x46   : > { %p794_p8 = pnand %p793_p4, %p787_p3 }
  0x48   : > { %797 = shalt.err (!%p794_p8)
}
  0x49   : > { %669 = dma.hbm_to_vmem [thread:$0]  (!%p998_p11), %s996_s29, 128, %s195_s5, %s184_s7  }
  0x4a   : > { %p1132_p10 = scmp.ne.s32.totalorder %s1127_s23, 0 }
  0x4b   : > { %s1019_s30 = sand.u32 (!%p1132_p10), 1, %s858_s16   ;;  %p1133_p4 = scmp.ne.s32.totalorder (!%p1132_p10), %s1125_s21, 0 }
  0x4c   : > { %203 = sbr.rel (%p1132_p10) target bundleno = 520 (0x208), region = 36  ;;  %s534_s8 = sshll.u32 (!%p1132_p10), %s1019_s30, 3 }
  0x4d   : > { %s206_s9 = scalar_lea.sflag (!%p1132_p10), [#allocation3], %s1019_s30  ;;  %s1025_s10 = scalar_lea.vmem (!%p1132_p10), [#allocation2], %s534_s8 }
  0x51   : > { %841 = dma.done.wait (%p1133_p4), %s206_s9, 128  }
  0x52   : > { %843 = vsyncadd (%p1133_p4), %s206_s9, 4294967168  ;;  %p1134_p8 = scmp.eq.s32.totalorder %s922_s19, 0 }
  0x54   : > { %845 = dma.done.wait (%p1134_p8), [#allocation6], 4096   ;;  %p1135_p3 = pmov %p1134_p8 }
  0x55   : > { %v873_v0 = vmov 0.0   ;;  %vm874_vm0 = vmmov 0   ;;  %v258_v1 = vld [vmem:[#allocation5 + $0x78] sm:$0xff]  ;;  %v257_v2 = vld [vmem:[#allocation5 + $0x70] sm:$0xff]  ;;  %v256_v3 = vld [vmem:[#allocation5 + $0x68] sm:$0xff]  ;;  %s540_s29 = sshll.u32 %s922_s19, 7 }
  0x56   : > { %847 = vsyncadd (%p1135_p3), [#allocation6], 4294963200  ;;  %577 = vmatprep.subr.mxu0 %v873_v0  ;;  %609 = vmatprep.mubr.msk.f32.mxu0 %vm874_vm0, %v873_v0  ;;  %v255_v4 = vld [vmem:[#allocation5 + $0x60] sm:$0xff]  ;;  %v344_v5 = vld [vmem:[#allocation7 + $0x78] sm:$0xff]  ;;  %s241_s5 = scalar_lea.vmem [#allocation8], %s534_s8  ;;  %s1079_s13 = scalar_lea.hbm %s1120_s4, %s540_s29 }
  0x57   : > { %612 = vmatprep.subr.mxu1 %v873_v0  ;;  %644 = vmatprep.mubr.msk.f32.mxu1 %vm874_vm0, %v873_v0  ;;  %v254_v6 = vld [vmem:[#allocation5 + $0x58] sm:$0xff]  ;;  %v343_v7 = vld [vmem:[#allocation7 + $0x70] sm:$0xff]  ;;  %v342_v8 = vld [vmem:[#allocation7 + $0x68] sm:$0xff]  ;;  %s437_s6 = sshll.u32 %s241_s5, 4  ;;  %s424_s25 = scalar_lea.sflag [#allocation4], %s1019_s30  ;;  %s438_s6 = int_to_ptr.vmem [resolvable:$true] %s437_s6 }
  0x58   : > { %578 = vmatpush3.msra.mxu0 %v258_v1  ;;  %613 = vmatpush3.msra.mxu1 %v344_v5  ;;  %v253_v9 = vld [vmem:[#allocation5 + $0x50] sm:$0xff]  ;;  %v341_v10 = vld [vmem:[#allocation7 + $0x60] sm:$0xff]  ;;  %v252_v11 = vld [vmem:[#allocation5 + $0x48] sm:$0xff]  ;;  %s798_s26 = scalar_lea.vmem %s438_s6, 128  ;;  %p1136_p0 = scmp.ne.s32.totalorder %s1130_s14, 0 }
  0x59   : > { %579 = vmatprep.subr.mxu0 %v873_v0  ;;  %614 = vmatprep.subr.mxu1 %v873_v0  ;;  %v340_v12 = vld [vmem:[#allocation7 + $0x58] sm:$0xff]  ;;  %v251_v13 = vld [vmem:[#allocation5 + $0x40] sm:$0xff]  ;;  %v339_v14 = vld [vmem:[#allocation7 + $0x50] sm:$0xff]  ;;  %p799_p11 = scmp.ne.s32.totalorder %s438_s6, %s798_s26  ;;  %s875_s19 = smov [#allocation8]  }
  0x5a   : > { %580 = vmatpush3.msra.mxu0 %v257_v2  ;;  %615 = vmatpush3.msra.mxu1 %v343_v7  ;;  %v250_v15 = vld [vmem:[#allocation5 + $0x38] sm:$0xff]  ;;  %v338_v16 = vld [vmem:[#allocation7 + $0x48] sm:$0xff]  ;;  %v249_v17 = vld [vmem:[#allocation5 + $0x30] sm:$0xff]  ;;  %s802_s24 = sshll.u32 %s875_s19, 4  ;;  %s803_s24 = int_to_ptr.vmem [resolvable:$false] %s802_s24 }
  0x5b   : > { %581 = vmatprep.subr.mxu0 %v873_v0  ;;  %616 = vmatprep.subr.mxu1 %v873_v0  ;;  %v337_v18 = vld [vmem:[#allocation7 + $0x40] sm:$0xff]  ;;  %v248_v19 = vld [vmem:[#allocation5 + $0x28] sm:$0xff]  ;;  %v336_v20 = vld [vmem:[#allocation7 + $0x38] sm:$0xff]  ;;  %p800_p1 = pnand %p799_p11, %p1136_p0  ;;  %s804_s27 = scalar_lea.vmem %s803_s24, 256 }
  0x5c   : > { %582 = vmatpush3.msra.mxu0 %v256_v3  ;;  %617 = vmatpush3.msra.mxu1 %v342_v8  ;;  %v247_v21 = vld [vmem:[#allocation5 + $0x20] sm:$0xff]  ;;  %v335_v22 = vld [vmem:[#allocation7 + $0x30] sm:$0xff]  ;;  %v246_v23 = vld [vmem:[#allocation5 + $0x18] sm:$0xff]  ;;  %p805_p6 = scmp.lt.s32.totalorder %s438_s6, %s803_s24  ;;  %p806_p12 = scmp.lt.s32.totalorder %s804_s27, %s798_s26 }
  0x5d   : > { %583 = vmatprep.subr.mxu0 %v873_v0  ;;  %618 = vmatprep.subr.mxu1 %v873_v0  ;;  %v334_v24 = vld [vmem:[#allocation7 + $0x28] sm:$0xff]  ;;  %v245_v25 = vld [vmem:[#allocation5 + $0x10] sm:$0xff]  ;;  %v333_v26 = vld [vmem:[#allocation7 + $0x20] sm:$0xff]  ;;  %p801_p2 = pneg %p800_p1 }
  0x5e   : > { %584 = vmatpush3.msra.mxu0 %v255_v4  ;;  %619 = vmatpush3.msra.mxu1 %v341_v10  ;;  %v244_v27 = vld [vmem:[#allocation5 + $0x8] sm:$0xff]  ;;  %v332_v28 = vld [vmem:[#allocation7 + $0x18] sm:$0xff]  ;;  %v243_v29 = vld [vmem:[#allocation5] sm:$0xff]  ;;  %p807_p7 = por %p806_p12, %p805_p6 }
  0x5f   : > { %585 = vmatprep.subr.mxu0 %v873_v0  ;;  %620 = vmatprep.subr.mxu1 %v873_v0  ;;  %v242_v30 = vld [vmem:[%s1025_s10] sm:$0xff]  ;;  %v330_v32 = vld [vmem:[#allocation7 + $0x8] sm:$0xff]  ;;  %v329_v33 = vld [vmem:[#allocation7] sm:$0xff] }
  0x60   : > { %586 = vmatpush3.msra.mxu0 %v254_v6  ;;  %621 = vmatpush3.msra.mxu1 %v340_v12  ;;  %v331_v31 = vld [vmem:[#allocation7 + $0x10] sm:$0xff]  ;;  %p808_p9 = pnand %p807_p7, %p801_p2 }
  0x61   : > { %587 = vmatprep.subr.mxu0 %v873_v0  ;;  %622 = vmatprep.subr.mxu1 %v873_v0  ;;  %v538_v36 = vld [vmem:[%s1119_s3] ss:$0 sm:$0xff] }
  0x62   : > { %588 = vmatpush3.msra.mxu0 %v253_v9  ;;  %623 = vmatpush3.msra.mxu1 %v339_v14 }
  0x63   : > { %589 = vmatprep.subr.mxu0 %v873_v0  ;;  %624 = vmatprep.subr.mxu1 %v873_v0 }
  0x64   : > { %590 = vmatpush3.msra.mxu0 %v252_v11  ;;  %625 = vmatpush3.msra.mxu1 %v338_v16 }
  0x65   : > { %591 = vmatprep.subr.mxu0 %v873_v0  ;;  %626 = vmatprep.subr.mxu1 %v873_v0 }
  0x66   : > { %592 = vmatpush3.msra.mxu0 %v251_v13  ;;  %627 = vmatpush3.msra.mxu1 %v337_v18 }
  0x67   : > { %593 = vmatprep.subr.mxu0 %v873_v0  ;;  %628 = vmatprep.subr.mxu1 %v873_v0 }
  0x68   : > { %594 = vmatpush3.msra.mxu0 %v250_v15  ;;  %629 = vmatpush3.msra.mxu1 %v336_v20 }
  0x69   : > { %595 = vmatprep.subr.mxu0 %v873_v0  ;;  %630 = vmatprep.subr.mxu1 %v873_v0 }
  0x6a   : > { %596 = vmatpush3.msra.mxu0 %v249_v17  ;;  %631 = vmatpush3.msra.mxu1 %v335_v22 }
  0x6b   : > { %597 = vmatprep.subr.mxu0 %v873_v0  ;;  %632 = vmatprep.subr.mxu1 %v873_v0 }
  0x6c   : > { %598 = vmatpush3.msra.mxu0 %v248_v19  ;;  %633 = vmatpush3.msra.mxu1 %v334_v24 }
  0x6d   : > { %599 = vmatprep.subr.mxu0 %v873_v0  ;;  %634 = vmatprep.subr.mxu1 %v873_v0 }
  0x6e   : > { %600 = vmatpush3.msra.mxu0 %v247_v21  ;;  %635 = vmatpush3.msra.mxu1 %v333_v26 }
  0x6f   : > { %601 = vmatprep.subr.mxu0 %v873_v0  ;;  %636 = vmatprep.subr.mxu1 %v873_v0 }
  0x70   : > { %602 = vmatpush3.msra.mxu0 %v246_v23  ;;  %637 = vmatpush3.msra.mxu1 %v332_v28 }
  0x71   : > { %603 = vmatprep.subr.mxu0 %v873_v0  ;;  %638 = vmatprep.subr.mxu1 %v873_v0 }
  0x72   : > { %604 = vmatpush3.msra.mxu0 %v245_v25  ;;  %639 = vmatpush3.msra.mxu1 %v331_v31 }
  0x73   : > { %605 = vmatprep.subr.mxu0 %v873_v0  ;;  %640 = vmatprep.subr.mxu1 %v873_v0 }
  0x74   : > { %606 = vmatpush3.msra.mxu0 %v244_v27  ;;  %641 = vmatpush3.msra.mxu1 %v330_v32 }
  0x75   : > { %607 = vmatprep.subr.mxu0 %v873_v0  ;;  %642 = vmatprep.subr.mxu1 %v873_v0 }
  0x76   : > { %608 = vmatpush3.msra.mxu0 %v243_v29  ;;  %643 = vmatpush3.msra.mxu1 %v329_v33 }
  0x77   : > { %610 = vmatmul.mubr.f32.vlgmr.msra.gmra.mxu0 %v242_v30 }
 0x137   : > { %v325_v34 = vpop.f32.mrf.mxu0 }
 0x138   : > { %645 = vmatmul.mubr.f32.vlgmr.msra.gmra.mxu1 %v325_v34 }
 0x139   : > { %v611_v35 = vpop.f32.mrf.mxu0 }
 0x1f8   : > { %v418_v37 = vpop.f32.mrf.mxu1 }
 0x1f9   : > { %v419_v38 = vadd.f32 %v538_v36, %v418_v37 }
 0x1fa   : > { %v646_v39 = vpop.f32.mrf.mxu1 }
 0x1fb   : > { %422 = vst [vmem:[%s241_s5] sm:$0xff] %v419_v38 }
 0x1fc   : > { %811 = shalt.err (!%p808_p9)
}
 0x1fd   : > { %s812_s28 = scalar_lea.hbm %s1079_s13, 128  ;;  %s816_s9 = scalar_lea.hbm %s1120_s4, 256 }
 0x1fe   : > { %p813_p13 = scmp.ne.s32.totalorder %s1079_s13, %s812_s28  ;;  %p817_p4 = scmp.lt.s32.totalorder %s1079_s13, %s1120_s4 }
 0x1ff   : > { %p818_p8 = scmp.lt.s32.totalorder %s816_s9, %s812_s28 }
 0x200   : > { %p814_p5 = pnand %p813_p13, %p1136_p0 }
 0x201   : > { %p819_p3 = por %p818_p8, %p817_p4 }
 0x202   : > { %p815_p10 = pneg %p814_p5 }
 0x204   : > { %p820_p11 = pnand %p819_p3, %p815_p10 }
 0x206   : > { %823 = shalt.err (!%p820_p11)
}
 0x207   : > { %657 = dma.vmem_to_hbm [thread:$0]  (%p1136_p0), %s438_s6, 128, %s1079_s13, %s424_s25  }
 0x208 PF: > { %s449_s23 = sand.u32 1, %s854_s15   ;;  %p1137_p1 = scmp.ne.s32.totalorder %s1126_s22, 0 }
 0x209   : > { %p1138_p2 = scmp.ge.s32.totalorder %s866_s18, 2  ;;  %s450_s29 = scalar_lea.sflag [#allocation4], %s449_s23 }
 0x20b   : > { %p671_p6 = pnand %p1138_p2, %p1137_p1 }
 0x20d   : > { %p672_p12 = pneg %p671_p6 }
 0x20f   : > { %849 = dma.done.wait (%p672_p12), %s450_s29, 128  }
 0x210   : > { %851 = vsyncadd (%p672_p12), %s450_s29, 4294967168  ;;  %p18_p7 = scmp.ge.s32.totalorder %s973_s11, 4   ;;  %s1139_s15 = smov %s858_s16 }
 0x211   : > { %s1140_s16 = smov %s862_s17  ;;  %s1141_s17 = smov %s989_s20 }
 0x212   : > { %s1142_s18 = smov %s973_s11  ;;  %20 = sbr.rel (!%p18_p7) target bundleno = 6 (0x6), region = 89 }
 0x217   :  { %455 = vsyncpa [#allocation3], 1 }
 0x218   :  { %457 = vsyncpa [#allocation3 + $0x1], 1 }
 0x219   :  { %458 = vsyncpa [#allocation6], 1 }
 0x21a   :  { %459 = vsyncpa [#allocation4], 1 }
 0x21b   :  { %461 = vsyncpa [#allocation4 + $0x1], 1 }

</bundles_post_ra>
